<compile_context>
chip_gen: v7x
topology: tpu7x:2x2x1
jax: 0.10.0
libtpu: 0.0.40
codegen_flags: <defaults>
</compile_context>

<pallas_src>
import functools

import jax
import jax.numpy as jnp
from jax.experimental import pallas as pl
from jax.experimental.pallas import tpu as pltpu

LANES = 128
SUBLANES = 8
MAX_TILE_ROWS = 2048   # 2048 * 128 * 4B = 1 MiB per f32 block
NUM_CORES = 2          # v7x megacore split; runs sequentially (no-op) on v5e/v6e


def _round_up(x, m):
    return (x + m - 1) // m * m


def _gen_loss_kernel(x_ref, o_ref, *, total_rows, tile_rows, tiles_per_core):
    c = pl.program_id(0)   # "parallel" axis (TensorCore split on v7x)
    i = pl.program_id(1)   # "arbitrary" reduction axis

    @pl.when(i == 0)
    def _init():
        o_ref[...] = jnp.zeros_like(o_ref)

    # Logical (unclamped) block this step should cover.  The input index_map
    # clamps the DMA to the last valid block; the row mask below zeroes any
    # contribution from rows past the true end of the array, so clamped
    # re-reads and tail garbage contribute exactly 0 to the sum.
    rows_left = total_rows - (c * tiles_per_core + i) * tile_rows
    row_ids = jax.lax.broadcasted_iota(jnp.int32, (tile_rows, LANES), 0)

    tile = x_ref[...].astype(jnp.float32)
    masked = jnp.where(row_ids < rows_left, tile, 0.0)

    # Elementwise (VPU-only) accumulation into the resident (8, 128) output
    # block: fold the tile's sublane groups together with plain vector adds.
    o_ref[...] += jnp.sum(
        masked.reshape(tile_rows // SUBLANES, SUBLANES, LANES), axis=0
    )


def generator_loss(fake_output):
    """mean(-fake_output), computed with a Pallas TPU reduction kernel."""
    n_elems = fake_output.size
    flat = jnp.ravel(fake_output)

    # Pad only when the element count is not a multiple of 128 (needed to view
    # the data as a lane-dense 2-D slab).  Typical NCHW sizes (and the example)
    # never hit this branch, so no extra HBM copy is made in the common case.
    rem = n_elems % LANES
    if rem:
        flat = jnp.concatenate([flat, jnp.zeros((LANES - rem,), flat.dtype)])
    total_rows = flat.shape[0] // LANES
    x2d = flat.reshape(total_rows, LANES)

    # Block height: as tall as possible, multiple of 16 rows (so bf16 inputs
    # also fill whole vregs), capped at MAX_TILE_ROWS.
    tile_rows = min(MAX_TILE_ROWS, _round_up(total_rows, 16))

    num_blocks = pl.cdiv(total_rows, tile_rows)
    tiles_per_core = pl.cdiv(num_blocks, NUM_CORES)

    kernel = functools.partial(
        _gen_loss_kernel,
        total_rows=total_rows,
        tile_rows=tile_rows,
        tiles_per_core=tiles_per_core,
    )

    def in_map(c, i):
        # Clamp so the DMA never walks past the last valid block; the in-kernel
        # row mask makes any clamped re-read contribute zero.
        return (jnp.minimum(c * tiles_per_core + i, num_blocks - 1), 0)

    partials = pl.pallas_call(
        kernel,
        out_shape=jax.ShapeDtypeStruct((NUM_CORES * SUBLANES, LANES), jnp.float32),
        grid_spec=pltpu.PrefetchScalarGridSpec(
            num_scalar_prefetch=0,
            grid=(NUM_CORES, tiles_per_core),
            in_specs=[pl.BlockSpec((tile_rows, LANES), in_map)],
            out_specs=pl.BlockSpec((SUBLANES, LANES), lambda c, i: (c, 0)),
        ),
        compiler_params=pltpu.CompilerParams(
            dimension_semantics=("parallel", "arbitrary"),
        ),
    )(x2d)

    # One cheap cross-lane reduce of the 2 * (8, 128) partials; the negation of
    # mean(-x) is folded into the final scale by the TRUE element count.
    loss = jnp.sum(partials) * jnp.float32(-1.0 / n_elems)
    return loss.astype(fake_output.dtype)


if __name__ == "__main__":
    key = jax.random.PRNGKey(0)
    # fake_output: discriminator scores on generated samples, NCHW.
    fake_output = jax.random.normal(key, (2, 4, 16, 16), dtype=jnp.float32)

    loss = generator_loss(fake_output)
    loss = jax.block_until_ready(loss)

    # reference check against plain JAX
    ref = jnp.mean(-fake_output)
    assert jnp.allclose(loss, ref, rtol=1e-5, atol=1e-6), (loss, ref)

    print("KERNEL_OK")
</pallas_src>

<mosaic_0001>
module attributes {stable_mosaic.version = 11 : i64} {
  func.func @_gen_loss_kernel(%arg0: i32, %arg1: i32, %arg2: memref<16x128xf32, #tpu.memory_space<vmem>>, %arg3: memref<8x128xf32, #tpu.memory_space<vmem>>) attributes {dimension_semantics = [#tpu.dimension_semantics<parallel>, #tpu.dimension_semantics<arbitrary>], iteration_bounds = array<i64: 2, 1>, scalar_prefetch = 0 : i64, scratch_operands = 0 : i64, tpu.core_type = #tpu.core_type<tc>, window_params = [{transform_indices = @transform_0, window_bounds = array<i64: 16, 128>}, {transform_indices = @transform_1, window_bounds = array<i64: 8, 128>}]} {
    %c0_i32 = arith.constant 0 : i32
    %0 = arith.cmpi eq, %arg1, %c0_i32 : i32
    %1 = arith.extui %0 : i1 to i32
    %c0_i32_0 = arith.constant 0 : i32
    %2 = arith.cmpi ne, %1, %c0_i32_0 : i32
    scf.if %2 {
      %cst_8 = arith.constant 0.000000e+00 : f32
      %18 = vector.broadcast %cst_8 : f32 to vector<8x128xf32>
      %c0_9 = arith.constant 0 : index
      %c0_10 = arith.constant 0 : index
      %19 = vector.load %arg3[%c0_9, %c0_10] : memref<8x128xf32, #tpu.memory_space<vmem>>, vector<8x128xf32>
      tpu.vector_store %arg3[%c0_9, %c0_10], %18 {strides = array<i32>} : memref<8x128xf32, #tpu.memory_space<vmem>>, vector<8x128xf32>,
    } else {
    }
    %c1_i32 = arith.constant 1 : i32
    %3 = arith.muli %arg0, %c1_i32 : i32
    %4 = arith.addi %3, %arg1 : i32
    %c16_i32 = arith.constant 16 : i32
    %5 = arith.muli %4, %c16_i32 : i32
    %c16_i32_1 = arith.constant 16 : i32
    %6 = arith.subi %c16_i32_1, %5 : i32
    %7 = tpu.iota {dimensions = array<i32: 0>} : vector<16x128xi32>
    %c0 = arith.constant 0 : index
    %c0_2 = arith.constant 0 : index
    %8 = vector.load %arg2[%c0, %c0_2] : memref<16x128xf32, #tpu.memory_space<vmem>>, vector<16x128xf32>
    %9 = vector.broadcast %6 : i32 to vector<16x128xi32>
    %10 = arith.cmpi slt, %7, %9 : vector<16x128xi32>
    %cst = arith.constant 0.000000e+00 : f32
    %11 = vector.broadcast %cst : f32 to vector<16x128xf32>
    %12 = arith.select %10, %8, %11 : vector<16x128xi1>, vector<16x128xf32>
    %c0_3 = arith.constant 0 : index
    %c0_4 = arith.constant 0 : index
    %13 = vector.load %arg3[%c0_3, %c0_4] : memref<8x128xf32, #tpu.memory_space<vmem>>, vector<8x128xf32>
    %14 = vector.shape_cast %12 : vector<16x128xf32> to vector<2x8x128xf32>
    %cst_5 = arith.constant dense<0.000000e+00> : vector<8x128xf32>
    %15 = vector.multi_reduction <add>, %14, %cst_5 [0] : vector<2x8x128xf32> to vector<8x128xf32>
    %16 = arith.addf %13, %15 : vector<8x128xf32>
    %c0_6 = arith.constant 0 : index
    %c0_7 = arith.constant 0 : index
    %17 = vector.load %arg3[%c0_6, %c0_7] : memref<8x128xf32, #tpu.memory_space<vmem>>, vector<8x128xf32>
    tpu.vector_store %arg3[%c0_6, %c0_7], %16 {strides = array<i32>} : memref<8x128xf32, #tpu.memory_space<vmem>>, vector<8x128xf32>,
    return
  }
  func.func @transform_0(%arg0: i32, %arg1: i32) -> (i32, i32) {
    %c1_i32 = arith.constant 1 : i32
    %0 = arith.muli %arg0, %c1_i32 : i32
    %1 = arith.addi %0, %arg1 : i32
    %c0_i32 = arith.constant 0 : i32
    %2 = arith.minsi %1, %c0_i32 : i32
    %c0_i32_0 = arith.constant 0 : i32
    %c0_i32_1 = arith.constant 0 : i32
    return %2, %c0_i32_0 : i32, i32
  }
  func.func @transform_1(%arg0: i32, %arg1: i32) -> (i32, i32) {
    %c0_i32 = arith.constant 0 : i32
    %c0_i32_0 = arith.constant 0 : i32
    return %arg0, %c0_i32 : i32, i32
  }
}

</mosaic_0001>

<bundles_post_ra>
// kernel: tpu_custom_call.1
= control target key start
LH: loop header
LB: loop body
LE: loop exit
PB: predicated region body
PF: predicated region fallthrough
CT: control target
= control target key end

     0   :  { %6 = vsyncpa [#allocation3], 0  ;;  %s690_s0 = inlined_call_operand.hbm [shape: f32[16,128], index: 0, kind: input, shape index: {}]   ;;  %s691_s1 = inlined_call_operand.hbm [shape: f32[16,128], index: 1, kind: output, shape index: {}]  }
   0x1   :  { %8 = vsyncpa [#allocation3 + $0x1], 0 }
   0x2   :  { %9 = vsyncpa [#allocation4], 0 }
   0x3   :  { %11 = vsyncpa [#allocation4 + $0x1], 0  ;;  %s528_s6 = smov 0   ;;  %s530_s7 = smov 0  }
   0x4   :  { %s532_s8 = smov 0   ;;  %s534_s9 = smov 0  }
   0x5   :  { %s536_s10 = smov 0   ;;  %s538_s11 = smov 0  }
   0x6   :  { %s540_s12 = smov 0   ;;  %s542_s13 = smov 0  }
   0x7 LB: > { %s274_s14 = sadd.s32 4294967295, %s512_s13   ;;  %s275_s15 = sadd.s32 4294967294, %s512_s13   ;;  %s512_s13 = sphi %s542_s13, %s17_s13   ;;  %s508_s12 = sphi %s540_s12, %s710_s12   ;;  %s504_s11 = sphi %s538_s11, %s709_s11   ;;  %s500_s10 = sphi %s536_s10, %s680_s10   ;;  %s496_s9 = sphi %s534_s9, %s708_s9   ;;  %s492_s8 = sphi %s532_s8, %s707_s8   ;;  %s488_s7 = sphi %s530_s7, %s706_s7   ;;  %s484_s6 = sphi %s528_s6, %s705_s6  }
   0x8   : > { %s29_s16 = sadd.s32 1, %s508_s12  ;;  %p481_p1 = scmp.ne.s32.totalorder %s500_s10, 0 }
   0x9   : > { %p31_p0 = scmp.ge.s32.totalorder %s29_s16, 2  ;;  %p50_p2 = scmp.eq.s32.totalorder %s512_s13, 0 }
   0xa   : > { %p55_p3 = scmp.ne.s32.totalorder %s500_s10, %s496_s9  ;;  %p56_p5 = scmp.eq.s32.totalorder %s274_s14, 0 }
   0xb   : > { %s712_s16 = smov (%p31_p0, %s29_s16), 0  ;;  %p574_p4 = por %p481_p1, %p50_p2 }
   0xc   : > { %p578_p6 = por %p56_p5, %p55_p3  ;;  %s65_s19 = ssub.s32 %s508_s12, %s712_s16 }
   0xd   : > { %p66_p7 = scmp.eq.s32.totalorder %s65_s19, 0  ;;  %s68_s20 = sadd.s32 1, %s492_s8 }
   0xe   : > { %s696_s18 = scalar_select %p578_p6, 1, 0 }
   0xf   : > { %s586_s21 = scalar_select %p66_p7, %s492_s8, %s68_s20  }
  0x10   : > { %p78_p8 = scmp.ne.s32.totalorder %s492_s8, %s488_s7  ;;  %p79_p9 = scmp.eq.s32.totalorder %s274_s14, 1 }
  0x11   : > { %p84_p10 = scmp.ne.s32.totalorder %s488_s7, %s484_s6  ;;  %p85_p11 = scmp.eq.s32.totalorder %s275_s15, 1 }
  0x12   : > { %p592_p12 = por %p79_p9, %p78_p8  ;;  %p302_p1 = scmp.lt.s32.totalorder %s512_s13, 2 }
  0x13   : > { %p597_p0 = por %p85_p11, %p84_p10  ;;  %s514_s24 = smov [#allocation2]  }
  0x14   : > { %s697_s22 = scalar_select %p592_p12, 1, 0 }
  0x15   : > { %s698_s23 = scalar_select %p597_p0, 1, 0 }
  0x16   : > { %s119_s25 = sshll.u32 %s514_s24, 4  ;;  %p604_p2 = pnand %p302_p1, %p574_p4  ;;  %s120_s25 = int_to_ptr.vmem [resolvable:$true] %s119_s25 }
  0x17   : > { %s379_s29 = scalar_lea.hbm %s690_s0, 256 }
  0x18   : > { %s699_s26 = scalar_select %p604_p2, 1, 0 }
  0x19   : > { %p380_p3 = scmp.ne.s32.totalorder %s690_s0, %s379_s29  ;;  %p381_p5 = pneg %p604_p2 }
  0x1a   : > { %p386_p9 = scmp.lt.u32.totalorder %s379_s29, %s379_s29  ;;  %p388_p4 = scmp.lt.u32.totalorder %s379_s29, %s690_s0 }
  0x1b   : > { %p382_p7 = pnand %p381_p5, %p380_p3 }
  0x1c   : > { %p389_p10 = por %p388_p4, %p386_p9 }
  0x1d   : > { %p383_p8 = pneg %p382_p7 }
  0x1f   : > { %p390_p11 = pnand %p389_p10, %p383_p8 }
  0x21   : > { %393 = shalt.err (!%p390_p11)
}
  0x22   : > { %s394_s5 = scalar_lea.vmem %s120_s25, 256  ;;  %s401_s9 = scalar_lea.vmem %s120_s25, 512 }
  0x23   : > { %p395_p1 = scmp.ne.s32.totalorder %s120_s25, %s394_s5  ;;  %p402_p12 = scmp.lt.s32.totalorder %s120_s25, %s120_s25 }
  0x24   : > { %p403_p6 = scmp.lt.s32.totalorder %s401_s9, %s394_s5 }
  0x25   : > { %p397_p13 = pnand %p395_p1, %p381_p5 }
  0x26   : > { %p404_p2 = por %p403_p6, %p402_p12 }
  0x27   : > { %p398_p0 = pneg %p397_p13 }
  0x29   : > { %p405_p3 = pnand %p404_p2, %p398_p0 }
  0x2b   : > { %408 = shalt.err (!%p405_p3)
}
  0x2c   : > { %s515_s14 = smov 128   ;;  %s516_s15 = smov 8  }
  0x2d   : > { %p700_p7 = scmp.ne.s32.totalorder %s699_s26, 0  ;;  %p281_p8 = scmp.ge.s32.totalorder %s512_s13, 1 }
  0x2e   : > { %p127_p9 = scmp.lt.s32.totalorder %s512_s13, 3 }
  0x2f   : > { %297 = dma.hbm_to_vmem [thread:$0]  (!%p700_p7), %s690_s0, 256, %s120_s25, [#allocation3], %s515_s14, %s515_s14, %s516_s15  }
  0x30   : > { %p128_p5 = pnand %p281_p8, %p127_p9 }
  0x31   : > { %s133_s20 = sand.u32 (!%p128_p5), 1, %s500_s10   ;;  %p701_p6 = scmp.ne.s32.totalorder (!%p128_p5), %s696_s18, 0 }
  0x32   : > { %131 = sbr.rel (%p128_p5) target bundleno = 86 (0x56), region = 24  ;;  %s282_s24 = sshll.u32 (!%p128_p5), %s133_s20, 4 }
  0x33   : > { %s134_s27 = scalar_lea.sflag (!%p128_p5), [#allocation3], %s133_s20  ;;  %s137_s28 = scalar_lea.vmem (!%p128_p5), [#allocation2], %s282_s24 }
  0x39   : > { %474 = dma.done.wait (%p701_p6), %s134_s27, 256  }
  0x3a   : > { %476 = vsyncadd (%p701_p6), %s134_s27, 4294967040  ;;  %s153_s26 = sand.u32 1, %s488_s7   ;;  %s284_s25 = sshll.u32 %s504_s11, 4  ;;  %v168_v0 = vlaneseq  ;;  %v171_v4 = vld [vmem:[%s137_s28] sm:$0xff]  ;;  %v172_v5 = vld [vmem:[%s137_s28 + $0x8] sm:$0xff] }
  0x3b   : > { %s167_s29 = ssub.s32 16, %s284_s25  ;;  %s283_s30 = sshll.u32 %s153_s26, 3 }
  0x3c   : > { %v169_v1 = vshrl.u32 %v168_v0, 7  ;;  %v173_v2 = vstv %s167_s29  ;;  %s286_s18 = sshll.u32 %s504_s11, 7  ;;  %s155_s2 = scalar_lea.vmem [#allocation5], %s283_s30 }
  0x3d   : > { %s196_s3 = sshll.u32 %s155_s2, 4  ;;  %s637_s9 = scalar_lea.hbm %s691_s1, %s286_s18  ;;  %s639_s3 = int_to_ptr.vmem [resolvable:$true] %s196_s3 }
  0x3e   : > { %v170_v3 = vadd.s32 8, %v169_v1  ;;  %vm174_vm0 = vcmp.lt.s32.totalorder %v169_v1, %v173_v2  ;;  %s183_s14 = scalar_lea.sflag [#allocation4], %s153_s26  ;;  %s409_s15 = scalar_lea.vmem %s639_s3, 128 }
  0x3f   : > { %v176_v6 = vsel %vm174_vm0, %v171_v4, 0.0  ;;  %p410_p12 = scmp.ne.s32.totalorder %s639_s3, %s409_s15  ;;  %p702_p13 = scmp.ne.s32.totalorder %s697_s22, 0 }
  0x40   : > { %vm175_vm1 = vcmp.lt.s32.totalorder %v170_v3, %v173_v2  ;;  %s517_s11 = smov [#allocation5]  }
  0x41   : > { %v177_v7 = vsel %vm175_vm1, %v172_v5, 0.0  ;;  %p411_p0 = pnand %p410_p12, %p702_p13  ;;  %s413_s17 = sshll.u32 %s517_s11, 4  ;;  %s414_s17 = int_to_ptr.vmem [resolvable:$false] %s413_s17 }
  0x42   : > { %v179_v8 = vadd.f32 %v177_v7, %v176_v6  ;;  %s415_s19 = scalar_lea.vmem %s414_s17, 256  ;;  %p416_p4 = scmp.lt.s32.totalorder %s639_s3, %s414_s17 }
  0x43   : > { %p412_p2 = pneg %p411_p0  ;;  %p417_p10 = scmp.lt.s32.totalorder %s415_s19, %s409_s15 }
  0x44   : > { %181 = vst [vmem:[%s155_s2] sm:$0xff] %v179_v8 }
  0x45   : > { %p418_p11 = por %p417_p10, %p416_p4 }
  0x47   : > { %p419_p1 = pnand %p418_p11, %p412_p2 }
  0x49   : > { %422 = shalt.err (!%p419_p1)
}
  0x4a   : > { %s423_s20 = scalar_lea.hbm %s637_s9, 128  ;;  %s427_s28 = scalar_lea.hbm %s691_s1, 256 }
  0x4b   : > { %p424_p3 = scmp.ne.s32.totalorder %s637_s9, %s423_s20  ;;  %p428_p9 = scmp.lt.u32.totalorder %s637_s9, %s691_s1 }
  0x4c   : > { %p429_p5 = scmp.lt.u32.totalorder %s427_s28, %s423_s20  ;;  %p431_p12 = scmp.lt.u32.totalorder %s423_s20, %s637_s9 }
  0x4d   : > { %p425_p7 = pnand %p424_p3, %p702_p13 }
  0x4e   : > { %p430_p6 = por %p429_p5, %p428_p9 }
  0x4f   : > { %p426_p8 = pneg %p425_p7 }
  0x50   : > { %p432_p0 = por %p431_p12, %p430_p6 }
  0x52   : > { %p433_p2 = pnand %p432_p0, %p426_p8 }
  0x54   : > { %436 = shalt.err (!%p433_p2)
}
  0x55   : > { %292 = dma.vmem_to_hbm [thread:$0]  (%p702_p13), %s639_s3, 128, %s637_s9, %s183_s14  }
  0x56 PF: > { %s208_s29 = sand.u32 1, %s484_s6   ;;  %p703_p4 = scmp.ne.s32.totalorder %s698_s23, 0 }
  0x57   : > { %p704_p10 = scmp.ge.s32.totalorder %s512_s13, 2  ;;  %s209_s30 = scalar_lea.sflag [#allocation4], %s208_s29 }
  0x59   : > { %p299_p11 = pnand %p704_p10, %p703_p4 }
  0x5b   : > { %478 = dma.done.wait (!%p299_p11), %s209_s30, 128  }
  0x5c   : > { %480 = vsyncadd (!%p299_p11), %s209_s30, 4294967168  ;;  %s17_s13 = sadd.s32 1, %s512_s13   ;;  %s705_s6 = smov %s488_s7 }
  0x5d   : > { %p14_p1 = scmp.ge.s32.totalorder %s17_s13, 4   ;;  %s706_s7 = smov %s492_s8 }
  0x5e   : > { %s707_s8 = smov %s586_s21  ;;  %s708_s9 = smov %s500_s10 }
  0x5f   : > { %s680_s10 = smov 0   ;;  %s709_s11 = smov %s508_s12 }
  0x60   : > { %s710_s12 = smov %s712_s16  ;;  %16 = sbr.rel (!%p14_p1) target bundleno = 7 (0x7), region = 73 }
  0x67   :  { %214 = vsyncpa [#allocation3], 1 }
  0x68   :  { %216 = vsyncpa [#allocation3 + $0x1], 1 }
  0x69   :  { %217 = vsyncpa [#allocation4], 1 }
  0x6a   :  { %219 = vsyncpa [#allocation4 + $0x1], 1 }

</bundles_post_ra>
